<compile_context>
chip_gen: v5e
topology: v5e:2x2
jax: 0.10.0
libtpu: 0.0.40
codegen_flags: <defaults>
</compile_context>

<pallas_src>
import functools

import jax
import jax.numpy as jnp
from jax.experimental import pallas as pl
from jax.experimental.pallas import tpu as pltpu


def lstm_block_kernel(x_ref, wih_t_ref, whh_t_ref, b_ref, wlin_t_ref, blin_ref,
                      out_ref, *, seq_len, batch, hidden):
    T, B, H = seq_len, batch, hidden

    # ---- Hoisted input projection (off the serial path): one big GEMM. ----
    # gx = X(T*B,H) @ W_ih^T(H,4H) + (b_ih + b_hh).  The g-gate columns/bias
    # were pre-scaled x2 in the wrapper (for the sigmoid-only gate trick).
    gx = (jnp.dot(x_ref[...], wih_t_ref[...],
                  preferred_element_type=jnp.float32)
          + b_ref[...])                                     # (T*B, 4H) value

    whh_t = whh_t_ref[...]                                  # (H, 4H), loaded once

    h = jnp.zeros((B, H), jnp.float32)                      # hx=None -> zeros
    c = jnp.zeros((B, H), jnp.float32)
    hs = []

    # Static, fully-unrolled time loop; carries live in vregs only.
    for t in range(T):
        gates = (gx[t * B:(t + 1) * B, :]
                 + jnp.dot(h, whh_t, preferred_element_type=jnp.float32))

        # ONE full-vreg sigmoid over all 4 gates (i, f, g, o — PyTorch order).
        # g columns were pre-scaled by 2, so tanh(z) = 2*sigmoid(2z) - 1.
        s = jax.nn.sigmoid(gates)                           # (B, 4H)
        i_g = s[:, 0 * H:1 * H]
        f_g = s[:, 1 * H:2 * H]
        g_g = 2.0 * s[:, 2 * H:3 * H] - 1.0
        o_g = s[:, 3 * H:4 * H]

        c = f_g * c + i_g * g_g
        h = o_g * jnp.tanh(c)                               # single tanh/step
        hs.append(h)

    # ---- Hoisted Linear + ReLU head: one GEMM + single lane-store. ----
    hs_all = jnp.concatenate(hs, axis=0)                    # (T*B, H), off serial path
    y = (jnp.dot(hs_all, wlin_t_ref[...],
                 preferred_element_type=jnp.float32)
         + blin_ref[...])
    out_ref[...] = jnp.maximum(y, 0.0).astype(out_ref.dtype)


@jax.jit
def lstm_block_forward(x, w_ih, w_hh, b_ih, b_hh, w_lin, b_lin):
    """x: (T, B, H) f32. Weights follow PyTorch conventions:
       w_ih, w_hh: (4H, H); b_ih, b_hh: (4H,); w_lin: (H, H); b_lin: (H,)."""
    T, B, H = x.shape

    # Weight-side prep (constant-foldable in a real model): transpose, pre-sum
    # the two LSTM biases, and scale the g-gate block x2 for the single-sigmoid
    # gate evaluation inside the kernel.
    gscale = jnp.ones((4 * H,), jnp.float32).at[2 * H:3 * H].set(2.0)
    x2d = x.reshape(T * B, H)
    wih_t = jnp.transpose(w_ih) * gscale[None, :]           # (H, 4H)
    whh_t = jnp.transpose(w_hh) * gscale[None, :]           # (H, 4H)
    b = ((b_ih + b_hh) * gscale).reshape(1, 4 * H)          # (1, 4H)
    wlin_t = jnp.transpose(w_lin)                           # (H, H)
    blin = b_lin.reshape(1, H)                              # (1, H)

    kernel = functools.partial(lstm_block_kernel, seq_len=T, batch=B, hidden=H)
    vmem_spec = pl.BlockSpec(memory_space=pltpu.MemorySpace.VMEM)

    out2d = pl.pallas_call(
        kernel,
        out_shape=jax.ShapeDtypeStruct((T * B, H), x.dtype),
        in_specs=[vmem_spec] * 6,
        out_specs=vmem_spec,
    )(x2d, wih_t, whh_t, b, wlin_t, blin)

    return out2d.reshape(T, B, H)


def lstm_block_reference(x, w_ih, w_hh, b_ih, b_hh, w_lin, b_lin):
    """Pure-JAX reference mirroring PyTorch LSTMBlock.forward (exact tanh)."""
    T, B, H = x.shape

    def step(carry, x_t):
        h, c = carry
        gates = x_t @ w_ih.T + h @ w_hh.T + b_ih + b_hh
        i = jax.nn.sigmoid(gates[:, 0 * H:1 * H])
        f = jax.nn.sigmoid(gates[:, 1 * H:2 * H])
        g = jnp.tanh(gates[:, 2 * H:3 * H])
        o = jax.nn.sigmoid(gates[:, 3 * H:4 * H])
        c = f * c + i * g
        h = o * jnp.tanh(c)
        return (h, c), h

    init = (jnp.zeros((B, H), jnp.float32), jnp.zeros((B, H), jnp.float32))
    _, hs = jax.lax.scan(step, init, x)                     # (T, B, H)
    y = hs @ w_lin.T + b_lin
    return jnp.maximum(y, 0.0)


if __name__ == "__main__":
    T, B, H = 8, 2, 32

    key = jax.random.PRNGKey(0)
    ks = jax.random.split(key, 8)
    bound = 1.0 / jnp.sqrt(H)   # PyTorch default uniform(-1/sqrt(H), 1/sqrt(H))

    x = jax.random.normal(ks[0], (T, B, H), jnp.float32)
    w_ih = jax.random.uniform(ks[1], (4 * H, H), jnp.float32, -bound, bound)
    w_hh = jax.random.uniform(ks[2], (4 * H, H), jnp.float32, -bound, bound)
    b_ih = jax.random.uniform(ks[3], (4 * H,), jnp.float32, -bound, bound)
    b_hh = jax.random.uniform(ks[4], (4 * H,), jnp.float32, -bound, bound)
    w_lin = jax.random.uniform(ks[5], (H, H), jnp.float32, -bound, bound)
    b_lin = jax.random.uniform(ks[6], (H,), jnp.float32, -bound, bound)

    out = lstm_block_forward(x, w_ih, w_hh, b_ih, b_hh, w_lin, b_lin)
    out = jax.block_until_ready(out)

    ref = lstm_block_reference(x, w_ih, w_hh, b_ih, b_hh, w_lin, b_lin)
    assert out.shape == (T, B, H)
    # Slightly above the f32 noise floor: tanh(z) = 2*sigmoid(2z) - 1 in the
    # kernel drifts a few ulp vs exact tanh in the reference.
    assert jnp.allclose(out, ref, atol=5e-5, rtol=5e-5), \
        f"max abs diff {jnp.max(jnp.abs(out - ref))}"

    print("KERNEL_OK")
</pallas_src>

<mosaic_0001>
module attributes {stable_mosaic.version = 11 : i64} {
  func.func @lstm_block_kernel(%arg0: memref<16x32xf32, #tpu.memory_space<vmem>>, %arg1: memref<32x128xf32, #tpu.memory_space<vmem>>, %arg2: memref<32x128xf32, #tpu.memory_space<vmem>>, %arg3: memref<1x128xf32, #tpu.memory_space<vmem>>, %arg4: memref<32x32xf32, #tpu.memory_space<vmem>>, %arg5: memref<1x32xf32, #tpu.memory_space<vmem>>, %arg6: memref<16x32xf32, #tpu.memory_space<vmem>>) attributes {dimension_semantics = [], scalar_prefetch = 0 : i64, scratch_operands = 0 : i64, tpu.core_type = #tpu.core_type<tc>} {
    %c0 = arith.constant 0 : index
    %c0_0 = arith.constant 0 : index
    %0 = vector.load %arg0[%c0, %c0_0] : memref<16x32xf32, #tpu.memory_space<vmem>>, vector<16x32xf32>
    %c0_1 = arith.constant 0 : index
    %c0_2 = arith.constant 0 : index
    %1 = vector.load %arg1[%c0_1, %c0_2] : memref<32x128xf32, #tpu.memory_space<vmem>>, vector<32x128xf32>
    %cst = arith.constant dense<0.000000e+00> : vector<16x128xf32>
    %2 = tpu.matmul %0, %1, %cst {dimension_numbers = #tpu.dot_dimension_numbers<[1], [0], [0], [1], [0, 0, 1, 1], [], []>} : vector<16x32xf32>, vector<32x128xf32>, vector<16x128xf32> -> vector<16x128xf32>
    %c0_3 = arith.constant 0 : index
    %c0_4 = arith.constant 0 : index
    %3 = vector.load %arg3[%c0_3, %c0_4] : memref<1x128xf32, #tpu.memory_space<vmem>>, vector<1x128xf32>
    %4 = vector.broadcast %3 : vector<1x128xf32> to vector<16x128xf32>
    %5 = arith.addf %2, %4 : vector<16x128xf32>
    %c0_5 = arith.constant 0 : index
    %c0_6 = arith.constant 0 : index
    %6 = vector.load %arg2[%c0_5, %c0_6] : memref<32x128xf32, #tpu.memory_space<vmem>>, vector<32x128xf32>
    %cst_7 = arith.constant 0.000000e+00 : f32
    %7 = vector.broadcast %cst_7 : f32 to vector<2x32xf32>
    %cst_8 = arith.constant 0.000000e+00 : f32
    %8 = vector.broadcast %cst_8 : f32 to vector<2x32xf32>
    %9 = vector.extract_strided_slice %5 {offsets = [0, 0], sizes = [2, 128], strides = [1, 1]} : vector<16x128xf32> to vector<2x128xf32>
    %cst_9 = arith.constant dense<0.000000e+00> : vector<2x128xf32>
    %10 = tpu.matmul %7, %6, %cst_9 {dimension_numbers = #tpu.dot_dimension_numbers<[1], [0], [0], [1], [0, 0, 1, 1], [], []>} : vector<2x32xf32>, vector<32x128xf32>, vector<2x128xf32> -> vector<2x128xf32>
    %11 = arith.addf %9, %10 : vector<2x128xf32>
    %12 = arith.negf %11 : vector<2x128xf32>
    %13 = math.exp %12 : vector<2x128xf32>
    %cst_10 = arith.constant 1.000000e+00 : f32
    %14 = vector.broadcast %cst_10 : f32 to vector<2x128xf32>
    %15 = arith.addf %14, %13 : vector<2x128xf32>
    %16 = arith.divf %14, %15 : vector<2x128xf32>
    %17 = vector.extract_strided_slice %16 {offsets = [0, 0], sizes = [2, 32], strides = [1, 1]} : vector<2x128xf32> to vector<2x32xf32>
    %18 = vector.extract_strided_slice %16 {offsets = [0, 32], sizes = [2, 32], strides = [1, 1]} : vector<2x128xf32> to vector<2x32xf32>
    %19 = vector.extract_strided_slice %16 {offsets = [0, 64], sizes = [2, 32], strides = [1, 1]} : vector<2x128xf32> to vector<2x32xf32>
    %cst_11 = arith.constant 2.000000e+00 : f32
    %20 = vector.broadcast %cst_11 : f32 to vector<2x32xf32>
    %21 = arith.mulf %20, %19 : vector<2x32xf32>
    %cst_12 = arith.constant 1.000000e+00 : f32
    %22 = vector.broadcast %cst_12 : f32 to vector<2x32xf32>
    %23 = arith.subf %21, %22 : vector<2x32xf32>
    %24 = vector.extract_strided_slice %16 {offsets = [0, 96], sizes = [2, 32], strides = [1, 1]} : vector<2x128xf32> to vector<2x32xf32>
    %25 = arith.mulf %18, %8 : vector<2x32xf32>
    %26 = arith.mulf %17, %23 : vector<2x32xf32>
    %27 = arith.addf %25, %26 : vector<2x32xf32>
    %28 = math.tanh %27 : vector<2x32xf32>
    %29 = arith.mulf %24, %28 : vector<2x32xf32>
    %30 = vector.extract_strided_slice %5 {offsets = [2, 0], sizes = [2, 128], strides = [1, 1]} : vector<16x128xf32> to vector<2x128xf32>
    %cst_13 = arith.constant dense<0.000000e+00> : vector<2x128xf32>
    %31 = tpu.matmul %29, %6, %cst_13 {dimension_numbers = #tpu.dot_dimension_numbers<[1], [0], [0], [1], [0, 0, 1, 1], [], []>} : vector<2x32xf32>, vector<32x128xf32>, vector<2x128xf32> -> vector<2x128xf32>
    %32 = arith.addf %30, %31 : vector<2x128xf32>
    %33 = arith.negf %32 : vector<2x128xf32>
    %34 = math.exp %33 : vector<2x128xf32>
    %cst_14 = arith.constant 1.000000e+00 : f32
    %35 = vector.broadcast %cst_14 : f32 to vector<2x128xf32>
    %36 = arith.addf %35, %34 : vector<2x128xf32>
    %37 = arith.divf %35, %36 : vector<2x128xf32>
    %38 = vector.extract_strided_slice %37 {offsets = [0, 0], sizes = [2, 32], strides = [1, 1]} : vector<2x128xf32> to vector<2x32xf32>
    %39 = vector.extract_strided_slice %37 {offsets = [0, 32], sizes = [2, 32], strides = [1, 1]} : vector<2x128xf32> to vector<2x32xf32>
    %40 = vector.extract_strided_slice %37 {offsets = [0, 64], sizes = [2, 32], strides = [1, 1]} : vector<2x128xf32> to vector<2x32xf32>
    %cst_15 = arith.constant 2.000000e+00 : f32
    %41 = vector.broadcast %cst_15 : f32 to vector<2x32xf32>
    %42 = arith.mulf %41, %40 : vector<2x32xf32>
    %cst_16 = arith.constant 1.000000e+00 : f32
    %43 = vector.broadcast %cst_16 : f32 to vector<2x32xf32>
    %44 = arith.subf %42, %43 : vector<2x32xf32>
    %45 = vector.extract_strided_slice %37 {offsets = [0, 96], sizes = [2, 32], strides = [1, 1]} : vector<2x128xf32> to vector<2x32xf32>
    %46 = arith.mulf %39, %27 : vector<2x32xf32>
    %47 = arith.mulf %38, %44 : vector<2x32xf32>
    %48 = arith.addf %46, %47 : vector<2x32xf32>
    %49 = math.tanh %48 : vector<2x32xf32>
    %50 = arith.mulf %45, %49 : vector<2x32xf32>
    %51 = vector.extract_strided_slice %5 {offsets = [4, 0], sizes = [2, 128], strides = [1, 1]} : vector<16x128xf32> to vector<2x128xf32>
    %cst_17 = arith.constant dense<0.000000e+00> : vector<2x128xf32>
    %52 = tpu.matmul %50, %6, %cst_17 {dimension_numbers = #tpu.dot_dimension_numbers<[1], [0], [0], [1], [0, 0, 1, 1], [], []>} : vector<2x32xf32>, vector<32x128xf32>, vector<2x128xf32> -> vector<2x128xf32>
    %53 = arith.addf %51, %52 : vector<2x128xf32>
    %54 = arith.negf %53 : vector<2x128xf32>
    %55 = math.exp %54 : vector<2x128xf32>
    %cst_18 = arith.constant 1.000000e+00 : f32
    %56 = vector.broadcast %cst_18 : f32 to vector<2x128xf32>
    %57 = arith.addf %56, %55 : vector<2x128xf32>
    %58 = arith.divf %56, %57 : vector<2x128xf32>
    %59 = vector.extract_strided_slice %58 {offsets = [0, 0], sizes = [2, 32], strides = [1, 1]} : vector<2x128xf32> to vector<2x32xf32>
    %60 = vector.extract_strided_slice %58 {offsets = [0, 32], sizes = [2, 32], strides = [1, 1]} : vector<2x128xf32> to vector<2x32xf32>
    %61 = vector.extract_strided_slice %58 {offsets = [0, 64], sizes = [2, 32], strides = [1, 1]} : vector<2x128xf32> to vector<2x32xf32>
    %cst_19 = arith.constant 2.000000e+00 : f32
    %62 = vector.broadcast %cst_19 : f32 to vector<2x32xf32>
    %63 = arith.mulf %62, %61 : vector<2x32xf32>
    %cst_20 = arith.constant 1.000000e+00 : f32
    %64 = vector.broadcast %cst_20 : f32 to vector<2x32xf32>
    %65 = arith.subf %63, %64 : vector<2x32xf32>
    %66 = vector.extract_strided_slice %58 {offsets = [0, 96], sizes = [2, 32], strides = [1, 1]} : vector<2x128xf32> to vector<2x32xf32>
    %67 = arith.mulf %60, %48 : vector<2x32xf32>
    %68 = arith.mulf %59, %65 : vector<2x32xf32>
    %69 = arith.addf %67, %68 : vector<2x32xf32>
    %70 = math.tanh %69 : vector<2x32xf32>
    %71 = arith.mulf %66, %70 : vector<2x32xf32>
    %72 = vector.extract_strided_slice %5 {offsets = [6, 0], sizes = [2, 128], strides = [1, 1]} : vector<16x128xf32> to vector<2x128xf32>
    %cst_21 = arith.constant dense<0.000000e+00> : vector<2x128xf32>
    %73 = tpu.matmul %71, %6, %cst_21 {dimension_numbers = #tpu.dot_dimension_numbers<[1], [0], [0], [1], [0, 0, 1, 1], [], []>} : vector<2x32xf32>, vector<32x128xf32>, vector<2x128xf32> -> vector<2x128xf32>
    %74 = arith.addf %72, %73 : vector<2x128xf32>
    %75 = arith.negf %74 : vector<2x128xf32>
    %76 = math.exp %75 : vector<2x128xf32>
    %cst_22 = arith.constant 1.000000e+00 : f32
    %77 = vector.broadcast %cst_22 : f32 to vector<2x128xf32>
    %78 = arith.addf %77, %76 : vector<2x128xf32>
    %79 = arith.divf %77, %78 : vector<2x128xf32>
    %80 = vector.extract_strided_slice %79 {offsets = [0, 0], sizes = [2, 32], strides = [1, 1]} : vector<2x128xf32> to vector<2x32xf32>
    %81 = vector.extract_strided_slice %79 {offsets = [0, 32], sizes = [2, 32], strides = [1, 1]} : vector<2x128xf32> to vector<2x32xf32>
    %82 = vector.extract_strided_slice %79 {offsets = [0, 64], sizes = [2, 32], strides = [1, 1]} : vector<2x128xf32> to vector<2x32xf32>
    %cst_23 = arith.constant 2.000000e+00 : f32
    %83 = vector.broadcast %cst_23 : f32 to vector<2x32xf32>
    %84 = arith.mulf %83, %82 : vector<2x32xf32>
    %cst_24 = arith.constant 1.000000e+00 : f32
    %85 = vector.broadcast %cst_24 : f32 to vector<2x32xf32>
    %86 = arith.subf %84, %85 : vector<2x32xf32>
    %87 = vector.extract_strided_slice %79 {offsets = [0, 96], sizes = [2, 32], strides = [1, 1]} : vector<2x128xf32> to vector<2x32xf32>
    %88 = arith.mulf %81, %69 : vector<2x32xf32>
    %89 = arith.mulf %80, %86 : vector<2x32xf32>
    %90 = arith.addf %88, %89 : vector<2x32xf32>
    %91 = math.tanh %90 : vector<2x32xf32>
    %92 = arith.mulf %87, %91 : vector<2x32xf32>
    %93 = vector.extract_strided_slice %5 {offsets = [8, 0], sizes = [2, 128], strides = [1, 1]} : vector<16x128xf32> to vector<2x128xf32>
    %cst_25 = arith.constant dense<0.000000e+00> : vector<2x128xf32>
    %94 = tpu.matmul %92, %6, %cst_25 {dimension_numbers = #tpu.dot_dimension_numbers<[1], [0], [0], [1], [0, 0, 1, 1], [], []>} : vector<2x32xf32>, vector<32x128xf32>, vector<2x128xf32> -> vector<2x128xf32>
    %95 = arith.addf %93, %94 : vector<2x128xf32>
    %96 = arith.negf %95 : vector<2x128xf32>
    %97 = math.exp %96 : vector<2x128xf32>
    %cst_26 = arith.constant 1.000000e+00 : f32
    %98 = vector.broadcast %cst_26 : f32 to vector<2x128xf32>
    %99 = arith.addf %98, %97 : vector<2x128xf32>
    %100 = arith.divf %98, %99 : vector<2x128xf32>
    %101 = vector.extract_strided_slice %100 {offsets = [0, 0], sizes = [2, 32], strides = [1, 1]} : vector<2x128xf32> to vector<2x32xf32>
    %102 = vector.extract_strided_slice %100 {offsets = [0, 32], sizes = [2, 32], strides = [1, 1]} : vector<2x128xf32> to vector<2x32xf32>
    %103 = vector.extract_strided_slice %100 {offsets = [0, 64], sizes = [2, 32], strides = [1, 1]} : vector<2x128xf32> to vector<2x32xf32>
    %cst_27 = arith.constant 2.000000e+00 : f32
    %104 = vector.broadcast %cst_27 : f32 to vector<2x32xf32>
    %105 = arith.mulf %104, %103 : vector<2x32xf32>
    %cst_28 = arith.constant 1.000000e+00 : f32
    %106 = vector.broadcast %cst_28 : f32 to vector<2x32xf32>
    %107 = arith.subf %105, %106 : vector<2x32xf32>
    %108 = vector.extract_strided_slice %100 {offsets = [0, 96], sizes = [2, 32], strides = [1, 1]} : vector<2x128xf32> to vector<2x32xf32>
    %109 = arith.mulf %102, %90 : vector<2x32xf32>
    %110 = arith.mulf %101, %107 : vector<2x32xf32>
    %111 = arith.addf %109, %110 : vector<2x32xf32>
    %112 = math.tanh %111 : vector<2x32xf32>
    %113 = arith.mulf %108, %112 : vector<2x32xf32>
    %114 = vector.extract_strided_slice %5 {offsets = [10, 0], sizes = [2, 128], strides = [1, 1]} : vector<16x128xf32> to vector<2x128xf32>
    %cst_29 = arith.constant dense<0.000000e+00> : vector<2x128xf32>
    %115 = tpu.matmul %113, %6, %cst_29 {dimension_numbers = #tpu.dot_dimension_numbers<[1], [0], [0], [1], [0, 0, 1, 1], [], []>} : vector<2x32xf32>, vector<32x128xf32>, vector<2x128xf32> -> vector<2x128xf32>
    %116 = arith.addf %114, %115 : vector<2x128xf32>
    %117 = arith.negf %116 : vector<2x128xf32>
    %118 = math.exp %117 : vector<2x128xf32>
    %cst_30 = arith.constant 1.000000e+00 : f32
    %119 = vector.broadcast %cst_30 : f32 to vector<2x128xf32>
    %120 = arith.addf %119, %118 : vector<2x128xf32>
    %121 = arith.divf %119, %120 : vector<2x128xf32>
    %122 = vector.extract_strided_slice %121 {offsets = [0, 0], sizes = [2, 32], strides = [1, 1]} : vector<2x128xf32> to vector<2x32xf32>
    %123 = vector.extract_strided_slice %121 {offsets = [0, 32], sizes = [2, 32], strides = [1, 1]} : vector<2x128xf32> to vector<2x32xf32>
    %124 = vector.extract_strided_slice %121 {offsets = [0, 64], sizes = [2, 32], strides = [1, 1]} : vector<2x128xf32> to vector<2x32xf32>
    %cst_31 = arith.constant 2.000000e+00 : f32
    %125 = vector.broadcast %cst_31 : f32 to vector<2x32xf32>
    %126 = arith.mulf %125, %124 : vector<2x32xf32>
    %cst_32 = arith.constant 1.000000e+00 : f32
    %127 = vector.broadcast %cst_32 : f32 to vector<2x32xf32>
    %128 = arith.subf %126, %127 : vector<2x32xf32>
    %129 = vector.extract_strided_slice %121 {offsets = [0, 96], sizes = [2, 32], strides = [1, 1]} : vector<2x128xf32> to vector<2x32xf32>
    %130 = arith.mulf %123, %111 : vector<2x32xf32>
    %131 = arith.mulf %122, %128 : vector<2x32xf32>
    %132 = arith.addf %130, %131 : vector<2x32xf32>
    %133 = math.tanh %132 : vector<2x32xf32>
    %134 = arith.mulf %129, %133 : vector<2x32xf32>
    %135 = vector.extract_strided_slice %5 {offsets = [12, 0], sizes = [2, 128], strides = [1, 1]} : vector<16x128xf32> to vector<2x128xf32>
    %cst_33 = arith.constant dense<0.000000e+00> : vector<2x128xf32>
    %136 = tpu.matmul %134, %6, %cst_33 {dimension_numbers = #tpu.dot_dimension_numbers<[1], [0], [0], [1], [0, 0, 1, 1], [], []>} : vector<2x32xf32>, vector<32x128xf32>, vector<2x128xf32> -> vector<2x128xf32>
    %137 = arith.addf %135, %136 : vector<2x128xf32>
    %138 = arith.negf %137 : vector<2x128xf32>
    %139 = math.exp %138 : vector<2x128xf32>
    %cst_34 = arith.constant 1.000000e+00 : f32
    %140 = vector.broadcast %cst_34 : f32 to vector<2x128xf32>
    %141 = arith.addf %140, %139 : vector<2x128xf32>
    %142 = arith.divf %140, %141 : vector<2x128xf32>
    %143 = vector.extract_strided_slice %142 {offsets = [0, 0], sizes = [2, 32], strides = [1, 1]} : vector<2x128xf32> to vector<2x32xf32>
    %144 = vector.extract_strided_slice %142 {offsets = [0, 32], sizes = [2, 32], strides = [1, 1]} : vector<2x128xf32> to vector<2x32xf32>
    %145 = vector.extract_strided_slice %142 {offsets = [0, 64], sizes = [2, 32], strides = [1, 1]} : vector<2x128xf32> to vector<2x32xf32>
    %cst_35 = arith.constant 2.000000e+00 : f32
    %146 = vector.broadcast %cst_35 : f32 to vector<2x32xf32>
    %147 = arith.mulf %146, %145 : vector<2x32xf32>
    %cst_36 = arith.constant 1.000000e+00 : f32
    %148 = vector.broadcast %cst_36 : f32 to vector<2x32xf32>
    %149 = arith.subf %147, %148 : vector<2x32xf32>
    %150 = vector.extract_strided_slice %142 {offsets = [0, 96], sizes = [2, 32], strides = [1, 1]} : vector<2x128xf32> to vector<2x32xf32>
    %151 = arith.mulf %144, %132 : vector<2x32xf32>
    %152 = arith.mulf %143, %149 : vector<2x32xf32>
    %153 = arith.addf %151, %152 : vector<2x32xf32>
    %154 = math.tanh %153 : vector<2x32xf32>
    %155 = arith.mulf %150, %154 : vector<2x32xf32>
    %156 = vector.extract_strided_slice %5 {offsets = [14, 0], sizes = [2, 128], strides = [1, 1]} : vector<16x128xf32> to vector<2x128xf32>
    %cst_37 = arith.constant dense<0.000000e+00> : vector<2x128xf32>
    %157 = tpu.matmul %155, %6, %cst_37 {dimension_numbers = #tpu.dot_dimension_numbers<[1], [0], [0], [1], [0, 0, 1, 1], [], []>} : vector<2x32xf32>, vector<32x128xf32>, vector<2x128xf32> -> vector<2x128xf32>
    %158 = arith.addf %156, %157 : vector<2x128xf32>
    %159 = arith.negf %158 : vector<2x128xf32>
    %160 = math.exp %159 : vector<2x128xf32>
    %cst_38 = arith.constant 1.000000e+00 : f32
    %161 = vector.broadcast %cst_38 : f32 to vector<2x128xf32>
    %162 = arith.addf %161, %160 : vector<2x128xf32>
    %163 = arith.divf %161, %162 : vector<2x128xf32>
    %164 = vector.extract_strided_slice %163 {offsets = [0, 0], sizes = [2, 32], strides = [1, 1]} : vector<2x128xf32> to vector<2x32xf32>
    %165 = vector.extract_strided_slice %163 {offsets = [0, 32], sizes = [2, 32], strides = [1, 1]} : vector<2x128xf32> to vector<2x32xf32>
    %166 = vector.extract_strided_slice %163 {offsets = [0, 64], sizes = [2, 32], strides = [1, 1]} : vector<2x128xf32> to vector<2x32xf32>
    %cst_39 = arith.constant 2.000000e+00 : f32
    %167 = vector.broadcast %cst_39 : f32 to vector<2x32xf32>
    %168 = arith.mulf %167, %166 : vector<2x32xf32>
    %cst_40 = arith.constant 1.000000e+00 : f32
    %169 = vector.broadcast %cst_40 : f32 to vector<2x32xf32>
    %170 = arith.subf %168, %169 : vector<2x32xf32>
    %171 = vector.extract_strided_slice %163 {offsets = [0, 96], sizes = [2, 32], strides = [1, 1]} : vector<2x128xf32> to vector<2x32xf32>
    %172 = arith.mulf %165, %153 : vector<2x32xf32>
    %173 = arith.mulf %164, %170 : vector<2x32xf32>
    %174 = arith.addf %172, %173 : vector<2x32xf32>
    %175 = math.tanh %174 : vector<2x32xf32>
    %176 = arith.mulf %171, %175 : vector<2x32xf32>
    %177 = tpu.concatenate %29, %50, %71, %92, %113, %134, %155, %176 in 0 : vector<2x32xf32>, vector<2x32xf32>, vector<2x32xf32>, vector<2x32xf32>, vector<2x32xf32>, vector<2x32xf32>, vector<2x32xf32>, vector<2x32xf32> -> vector<16x32xf32>
    %c0_41 = arith.constant 0 : index
    %c0_42 = arith.constant 0 : index
    %178 = vector.load %arg4[%c0_41, %c0_42] : memref<32x32xf32, #tpu.memory_space<vmem>>, vector<32x32xf32>
    %cst_43 = arith.constant dense<0.000000e+00> : vector<16x32xf32>
    %179 = tpu.matmul %177, %178, %cst_43 {dimension_numbers = #tpu.dot_dimension_numbers<[1], [0], [0], [1], [0, 0, 1, 1], [], []>} : vector<16x32xf32>, vector<32x32xf32>, vector<16x32xf32> -> vector<16x32xf32>
    %c0_44 = arith.constant 0 : index
    %c0_45 = arith.constant 0 : index
    %180 = vector.load %arg5[%c0_44, %c0_45] : memref<1x32xf32, #tpu.memory_space<vmem>>, vector<1x32xf32>
    %181 = vector.broadcast %180 : vector<1x32xf32> to vector<16x32xf32>
    %182 = arith.addf %179, %181 : vector<16x32xf32>
    %cst_46 = arith.constant 0.000000e+00 : f32
    %183 = vector.broadcast %cst_46 : f32 to vector<16x32xf32>
    %184 = arith.maximumf %182, %183 : vector<16x32xf32>
    %c0_47 = arith.constant 0 : index
    %c0_48 = arith.constant 0 : index
    %185 = vector.load %arg6[%c0_47, %c0_48] : memref<16x32xf32, #tpu.memory_space<vmem>>, vector<16x32xf32>
    tpu.vector_store %arg6[%c0_47, %c0_48], %184 {strides = array<i32>} : memref<16x32xf32, #tpu.memory_space<vmem>>, vector<16x32xf32>,
    return
  }
}

</mosaic_0001>

<bundles_post_ra>
// kernel: lstm_block_forward.1
= control target key start
LH: loop header
LB: loop body
LE: loop exit
PB: predicated region body
PF: predicated region fallthrough
CT: control target
= control target key end

     0   :  { %s1014_s0 = inlined_call_operand.vmem [shape: f32[16,32], index: 0, kind: input, shape index: {}]   ;;  %s1015_s1 = inlined_call_operand.vmem [shape: f32[32,128], index: 1, kind: input, shape index: {}]   ;;  %s1016_s2 = inlined_call_operand.vmem [shape: f32[32,128], index: 2, kind: input, shape index: {}]   ;;  %s1017_s3 = inlined_call_operand.vmem [shape: f32[1,128], index: 3, kind: input, shape index: {}]   ;;  %s1018_s4 = inlined_call_operand.vmem [shape: f32[32,32], index: 4, kind: input, shape index: {}]   ;;  %s1019_s5 = inlined_call_operand.vmem [shape: f32[1,32], index: 5, kind: input, shape index: {}]   ;;  %s1020_s6 = inlined_call_operand.hbm [shape: f32[16,32], index: 6, kind: output, shape index: {}]  }
   0x1   :  { %v29_v0 = vld [vmem:[%s1015_s1 + $0x18] sm:$0xff]  ;;  %v28_v1 = vld [vmem:[%s1015_s1 + $0x10] sm:$0xff]  ;;  %v27_v4 = vld [vmem:[%s1015_s1 + $0x8] sm:$0xff] }
   0x2   :  { %v853_v2 = vld [vmem:[%s1016_s2 + $0x18] sm:$0xff]  ;;  %53 = vmatpush.msra.mxu0 %v29_v0  ;;  %v859_v3 = vld [vmem:[%s1016_s2 + $0x10] sm:$0xff]  ;;  %v867_v5 = vld [vmem:[%s1016_s2 + $0x8] sm:$0xff] }
   0x3   :  { %83 = vmatpush.msra.mxu1 %v853_v2  ;;  %147 = vmatpush.msra.mxu3 %v853_v2  ;;  %v26_v6 = vld [vmem:[%s1015_s1] sm:$0xff] }
   0x4   :  { %360 = vmatpush.msra.mxu2 %v853_v2  ;;  %54 = vmatpush.msra.mxu0 %v28_v1  ;;  %v878_v7 = vld [vmem:[%s1016_s2] sm:$0xff] }
   0x5   :  { %84 = vmatpush.msra.mxu1 %v859_v3  ;;  %148 = vmatpush.msra.mxu3 %v859_v3 }
   0x6   :  { %361 = vmatpush.msra.mxu2 %v859_v3 }
   0x7   :  { %11 = vsyncpa [#allocation3], 0  ;;  %55 = vmatpush.msra.mxu0 %v27_v4  ;;  %85 = vmatpush.msra.mxu1 %v867_v5  ;;  %v24_v8 = vld [vmem:[%s1014_s0] sm:$0xff]  ;;  %vm34_vm0 = vcmask 261120   ;;  %v803_v9 = vmov 0.0   ;;  %s805_s15 = smov 32  }
   0x8   :  { %149 = vmatpush.msra.mxu3 %v867_v5  ;;  %362 = vmatpush.msra.mxu2 %v867_v5  ;;  %v911_v10 = vld [vmem:[%s1017_s3] ss:$0 sm:$0xff]  ;;  %s804_s3 = smov 64   ;;  %vm622_vm13 = vcmask 1041408   ;;  %vm624_vm14 = vcmask 1043456   ;;  %s807_s30 = smov 128  }
   0x9   :  { %56 = vmatpush.msra.mxu0 %v26_v6  ;;  %86 = vmatpush.msra.mxu1 %v878_v7  ;;  %s808_s7 = smov 8  }
   0xa   :  { %694 = vmatmul.msk.f32.vlgmr.msra.gmra.mxu0 %vm34_vm0, %v24_v8  ;;  %87 = vmatmul.f32.vlgmr.msra.gmra.mxu1 %v803_v9 }
   0xb   :  { %150 = vmatpush.msra.mxu3 %v878_v7  ;;  %289 = vmatpush.msrb.mxu1 %v853_v2 }
   0xc   :  { %363 = vmatpush.msra.mxu2 %v878_v7  ;;  %498 = vmatpush.msrb.mxu0 %v853_v2 }
   0xd   :  { %218 = vmatpush.msrb.mxu3 %v853_v2  ;;  %290 = vmatpush.msrb.mxu1 %v859_v3 }
   0xe   :  { %499 = vmatpush.msrb.mxu0 %v859_v3 }
   0xf   :  { %219 = vmatpush.msrb.mxu3 %v859_v3  ;;  %291 = vmatpush.msrb.mxu1 %v867_v5 }
  0x10   :  { %500 = vmatpush.msrb.mxu0 %v867_v5 }
  0x11   :  { %220 = vmatpush.msrb.mxu3 %v867_v5  ;;  %292 = vmatpush.msrb.mxu1 %v878_v7 }
  0x12   :  { %501 = vmatpush.msrb.mxu0 %v878_v7 }
  0x13   :  { %221 = vmatpush.msrb.mxu3 %v878_v7  ;;  %569 = vmatpush.msra.mxu1 %v853_v2 }
  0x15   :  { %570 = vmatpush.msra.mxu1 %v859_v3 }
  0x17   :  { %571 = vmatpush.msra.mxu1 %v867_v5 }
  0x19   :  { %572 = vmatpush.msra.mxu1 %v878_v7 }
  0x87   :  { %v58_v11 = vpop.f32.mrf.mxu0  ;;  %v88_v12 = vpop.f32.mrf.mxu1 }
  0x88   :  { %v914_v13 = vadd.f32 %v911_v10, %v58_v11 }
  0x8a   :  { %v91_v14 = vadd.f32 %v88_v12, %v914_v13 }
  0x8c   :  { %v696_v15 = vmul.f32 -1.442695, %v91_v14 }
  0x8e   :  { %729 = vpow2.f32 %v696_v15 }
  0x94   :  { %v730_v16 = vpop.eup %729 }
  0x95   :  { %v95_v17 = vadd.f32 1.0, %v730_v16 }
  0x97   :  { %731 = vrcp.f32 %v95_v17  ;;  %v107_v21 = vand.u32 2147483648, %v95_v17  ;;  %v105_v23 = vand.u32 2147483647, %v95_v17  ;;  %vm101_vm2 = vweird.f32 %v95_v17 }
  0x99   :  { %v108_v25 = vor.u32 1.1754944e-38, %v107_v21  ;;  %vm106_vm4 = vcmp.eq.f32.partialorder %v105_v23, 8.507059e+37 }
  0x9d   :  { %v732_v18 = vpop.eup %731 }
  0x9e   :  { %v97_v19 = vmul.f32 %v732_v18, %v95_v17  ;;  %vm102_vm1 = vweird.f32 %v732_v18 }
  0x9f   :  { %vm103_vm3 = vmor %vm101_vm2, %vm102_vm1 }
  0xa0   :  { %v98_v20 = vsub.f32 1.0, %v97_v19 }
  0xa2   :  { %v99_v22 = vmul.f32 %v732_v18, %v98_v20 }
  0xa4   :  { %v100_v24 = vadd.f32 %v732_v18, %v99_v22 }
  0xa6   :  { %v104_v26 = vsel %vm103_vm3, %v732_v18, %v100_v24 }
  0xa7   :  { %v109_v27 = vsel %vm106_vm4, %v108_v25, %v104_v26  ;;  %vm626_vm4 = vcmask 1045504  }
  0xa8   :  { %v111_v28 = vmul.f32 2.0, %v109_v27  ;;  %v113_v32 = vmul.f32 0.0, %v109_v27 }
  0xaa   :  { %v697_v29 = vadd.f32 -1.0, %v111_v28 }
  0xac   :  { %115 = vrot.lane.b32.xlu0 %v697_v29, %s804_s3 }
 0x11e   :  { %v116_v30 = vpop.permute.xlu0 %115 }
 0x11f   :  { %v118_v31 = vmul.f32 %v116_v30, %v109_v27 }
 0x121   :  { %120 = vrot.lane.b32.xlu0 %v118_v31, %s805_s15 }
 0x193   :  { %v121_v33 = vpop.permute.xlu0 %120 }
 0x194   :  { %v123_v34 = vadd.f32 %v121_v33, %v113_v32 }
 0x196   :  { %733 = vtanh.f32 %v123_v34  ;;  %v181_v59 = vrot.slane %v123_v34, 6 }
 0x19c   :  { %v734_v35 = vpop.eup %733 }
 0x19d   :  { %126 = vrot.lane.b32.xlu1 %v734_v35, %s804_s3 }
 0x20f   :  { %v127_v36 = vpop.permute.xlu1 %126 }
 0x210   :  { %v920_v37 = vmul.f32 %v127_v36, %v109_v27 }
 0x212   :  { %131 = vrot.lane.b32.xlu1 %v920_v37, %s805_s15 }
 0x284   :  { %v132_v38 = vpop.permute.xlu1 %131 }
 0x285   :  { %698 = vmatmul.msk.f32.vlgmr.msra.gmra.mxu3 %vm34_vm0, %v132_v38 }
 0x286   :  { %427 = vmatpush.msra.mxu3 %v853_v2 }
 0x288   :  { %428 = vmatpush.msra.mxu3 %v859_v3 }
 0x28a   :  { %429 = vmatpush.msra.mxu3 %v867_v5 }
 0x28c   :  { %430 = vmatpush.msra.mxu3 %v878_v7 }
 0x308   :  { %v152_v39 = vpop.f32.mrf.mxu3 }
 0x309   :  { %v156_v40 = vrot.slane %v152_v39, 6 }
 0x30b   :  { %v158_v41 = vadd.f32 %v156_v40, %v914_v13 }
 0x30d   :  { %v699_v42 = vmul.f32 -1.442695, %v158_v41 }
 0x30f   :  { %735 = vpow2.f32 %v699_v42 }
 0x315   :  { %v736_v43 = vpop.eup %735 }
 0x316   :  { %v162_v44 = vadd.f32 1.0, %v736_v43 }
 0x318   :  { %737 = vrcp.f32 %v162_v44  ;;  %v174_v48 = vand.u32 2147483648, %v162_v44  ;;  %v172_v50 = vand.u32 2147483647, %v162_v44  ;;  %vm168_vm6 = vweird.f32 %v162_v44 }
 0x31a   :  { %v175_v52 = vor.u32 1.1754944e-38, %v174_v48  ;;  %vm173_vm8 = vcmp.eq.f32.partialorder %v172_v50, 8.507059e+37 }
 0x31e   :  { %v738_v45 = vpop.eup %737 }
 0x31f   :  { %v164_v46 = vmul.f32 %v738_v45, %v162_v44  ;;  %vm169_vm5 = vweird.f32 %v738_v45 }
 0x320   :  { %vm170_vm7 = vmor %vm168_vm6, %vm169_vm5 }
 0x321   :  { %v165_v47 = vsub.f32 1.0, %v164_v46 }
 0x323   :  { %v166_v49 = vmul.f32 %v738_v45, %v165_v47 }
 0x325   :  { %v167_v51 = vadd.f32 %v738_v45, %v166_v49 }
 0x327   :  { %v171_v53 = vsel %vm170_vm7, %v738_v45, %v167_v51 }
 0x328   :  { %v176_v54 = vsel %vm173_vm8, %v175_v52, %v171_v53 }
 0x329   :  { %v178_v55 = vmul.f32 2.0, %v176_v54  ;;  %v183_v60 = vmul.f32 %v181_v59, %v176_v54 }
 0x32b   :  { %v700_v56 = vadd.f32 -1.0, %v178_v55 }
 0x32d   :  { %185 = vrot.lane.b32.xlu2 %v700_v56, %s804_s3 }
 0x387   :  { %v186_v57 = vpop.permute.xlu2 %185 }
 0x388   :  { %v188_v58 = vmul.f32 %v186_v57, %v176_v54 }
 0x38a   :  { %190 = vrot.lane.b32.xlu2 %v188_v58, %s805_s15 }
 0x3e4   :  { %v191_v61 = vpop.permute.xlu2 %190 }
 0x3e5   :  { %v193_v62 = vadd.f32 %v191_v61, %v183_v60 }
 0x3e7   :  { %739 = vtanh.f32 %v193_v62  ;;  %v252_v26 = vrot.slane %v193_v62, 6 }
 0x3ed   :  { %v740_v63 = vpop.eup %739 }
 0x3ee   :  { %196 = vrot.lane.b32.xlu0 %v740_v63, %s804_s3 }
 0x460   :  { %v197_v0 = vpop.permute.xlu0 %196 }
 0x461   :  { %v199_v1 = vmul.f32 %v197_v0, %v176_v54 }
 0x463   :  { %v201_v2 = vrot.slane %v199_v1, 2  ;;  %v623_v33 = vsel %vm622_vm13, %v920_v37, %v199_v1  ;;  %v25_v1 = vld [vmem:[%s1014_s0 + $0x8] sm:$0xff] }
 0x464   :  { %695 = vmatmul.msk.f32.gmra.mxu0 %vm34_vm0, %v25_v1 }
 0x465   :  { %202 = vrot.lane.b32.xlu1 %v201_v2, %s805_s15 }
 0x4d7   :  { %v203_v3 = vpop.permute.xlu1 %202 }
 0x4d8   :  { %701 = vmatmul.msk.f32.vlgmr.msrb.gmra.mxu3 %vm34_vm0, %v203_v3 }
 0x4e1   :  { %v61_v3 = vpop.f32.mrf.mxu0 }
 0x55b   :  { %v223_v4 = vpop.f32.mrf.mxu3 }
 0x55c   :  { %v227_v5 = vrot.slane %v223_v4, 4  ;;  %v958_v4 = vadd.f32 %v911_v10, %v61_v3 }
 0x55e   :  { %v229_v6 = vadd.f32 %v227_v5, %v914_v13 }
 0x560   :  { %v702_v7 = vmul.f32 -1.442695, %v229_v6 }
 0x562   :  { %741 = vpow2.f32 %v702_v7 }
 0x568   :  { %v742_v8 = vpop.eup %741 }
 0x569   :  { %v233_v9 = vadd.f32 1.0, %v742_v8 }
 0x56b   :  { %743 = vrcp.f32 %v233_v9  ;;  %v245_v15 = vand.u32 2147483648, %v233_v9  ;;  %v243_v17 = vand.u32 2147483647, %v233_v9  ;;  %vm239_vm10 = vweird.f32 %v233_v9 }
 0x56d   :  { %v246_v19 = vor.u32 1.1754944e-38, %v245_v15  ;;  %vm244_vm12 = vcmp.eq.f32.partialorder %v243_v17, 8.507059e+37 }
 0x571   :  { %v744_v11 = vpop.eup %743 }
 0x572   :  { %v235_v12 = vmul.f32 %v744_v11, %v233_v9  ;;  %vm240_vm9 = vweird.f32 %v744_v11 }
 0x573   :  { %vm241_vm11 = vmor %vm239_vm10, %vm240_vm9 }
 0x574   :  { %v236_v14 = vsub.f32 1.0, %v235_v12 }
 0x576   :  { %v237_v16 = vmul.f32 %v744_v11, %v236_v14 }
 0x578   :  { %v238_v18 = vadd.f32 %v744_v11, %v237_v16 }
 0x57a   :  { %v242_v20 = vsel %vm241_vm11, %v744_v11, %v238_v18 }
 0x57b   :  { %v247_v21 = vsel %vm244_vm12, %v246_v19, %v242_v20 }
 0x57c   :  { %v249_v22 = vmul.f32 2.0, %v247_v21  ;;  %v254_v27 = vmul.f32 %v252_v26, %v247_v21 }
 0x57e   :  { %v703_v23 = vadd.f32 -1.0, %v249_v22 }
 0x580   :  { %256 = vrot.lane.b32.xlu2 %v703_v23, %s804_s3 }
 0x5da   :  { %v257_v24 = vpop.permute.xlu2 %256 }
 0x5db   :  { %v259_v25 = vmul.f32 %v257_v24, %v247_v21 }
 0x5dd   :  { %261 = vrot.lane.b32.xlu0 %v259_v25, %s805_s15 }
 0x64f   :  { %v262_v28 = vpop.permute.xlu0 %261 }
 0x650   :  { %v264_v29 = vadd.f32 %v262_v28, %v254_v27 }
 0x652   :  { %745 = vtanh.f32 %v264_v29  ;;  %v323_v56 = vrot.slane %v264_v29, 6 }
 0x658   :  { %v746_v30 = vpop.eup %745 }
 0x659   :  { %267 = vrot.lane.b32.xlu1 %v746_v30, %s804_s3 }
 0x6cb   :  { %v268_v31 = vpop.permute.xlu1 %267 }
 0x6cc   :  { %v270_v32 = vmul.f32 %v268_v31, %v247_v21 }
 0x6ce   :  { %v272_v34 = vrot.slane %v270_v32, 4  ;;  %v625_v35 = vsel %vm624_vm14, %v623_v33, %v270_v32 }
 0x6d0   :  { %273 = vrot.lane.b32.xlu2 %v272_v34, %s805_s15 }
 0x72a   :  { %v274_v36 = vpop.permute.xlu2 %273 }
 0x72b   :  { %704 = vmatmul.msk.f32.vlgmr.msrb.gmra.mxu1 %vm34_vm0, %v274_v36 }
 0x7a8   :  { %v294_v38 = vpop.f32.mrf.mxu1 }
 0x7a9   :  { %v298_v39 = vrot.slane %v294_v38, 2 }
 0x7ab   :  { %v300_v40 = vadd.f32 %v298_v39, %v914_v13 }
 0x7ad   :  { %v705_v41 = vmul.f32 -1.442695, %v300_v40 }
 0x7af   :  { %747 = vpow2.f32 %v705_v41 }
 0x7b5   :  { %v748_v42 = vpop.eup %747 }
 0x7b6   :  { %v304_v43 = vadd.f32 1.0, %v748_v42 }
 0x7b8   :  { %749 = vrcp.f32 %v304_v43  ;;  %v316_v46 = vand.u32 2147483648, %v304_v43  ;;  %v314_v48 = vand.u32 2147483647, %v304_v43  ;;  %vm310_vm1 = vweird.f32 %v304_v43 }
 0x7ba   :  { %v317_v50 = vor.u32 1.1754944e-38, %v316_v46  ;;  %vm315_vm3 = vcmp.eq.f32.partialorder %v314_v48, 8.507059e+37 }
 0x7be   :  { %v750_v44 = vpop.eup %749 }
 0x7bf   :  { %v306_v45 = vmul.f32 %v750_v44, %v304_v43  ;;  %vm311_vm15 = vweird.f32 %v750_v44 }
 0x7c0   :  { %vm312_vm2 = vmor %vm310_vm1, %vm311_vm15 }
 0x7c1   :  { %v307_v37 = vsub.f32 1.0, %v306_v45 }
 0x7c3   :  { %v308_v47 = vmul.f32 %v750_v44, %v307_v37 }
 0x7c5   :  { %v309_v49 = vadd.f32 %v750_v44, %v308_v47 }
 0x7c7   :  { %v313_v51 = vsel %vm312_vm2, %v750_v44, %v309_v49 }
 0x7c8   :  { %v318_v52 = vsel %vm315_vm3, %v317_v50, %v313_v51 }
 0x7c9   :  { %v320_v13 = vmul.f32 2.0, %v318_v52  ;;  %v325_v57 = vmul.f32 %v323_v56, %v318_v52 }
 0x7cb   :  { %v706_v53 = vadd.f32 -1.0, %v320_v13 }
 0x7cd   :  { %327 = vrot.lane.b32.xlu0 %v706_v53, %s804_s3 }
 0x83f   :  { %v328_v54 = vpop.permute.xlu0 %327 }
 0x840   :  { %v330_v55 = vmul.f32 %v328_v54, %v318_v52 }
 0x842   :  { %332 = vrot.lane.b32.xlu1 %v330_v55, %s805_s15 }
 0x8b4   :  { %v333_v58 = vpop.permute.xlu1 %332 }
 0x8b5   :  { %v335_v59 = vadd.f32 %v333_v58, %v325_v57 }
 0x8b7   :  { %751 = vtanh.f32 %v335_v59  ;;  %v391_v25 = vrot.slane %v335_v59, 6 }
 0x8bd   :  { %v752_v60 = vpop.eup %751 }
 0x8be   :  { %338 = vrot.lane.b32.xlu2 %v752_v60, %s804_s3 }
 0x918   :  { %v339_v61 = vpop.permute.xlu2 %338 }
 0x919   :  { %v341_v62 = vmul.f32 %v339_v61, %v318_v52 }
 0x91b   :  { %v343_v63 = vrot.slane %v341_v62, 6  ;;  %v949_v0 = vsel %vm626_vm4, %v625_v35, %v341_v62 }
 0x91d   :  { %344 = vrot.lane.b32.xlu0 %v343_v63, %s805_s15 }
 0x98f   :  { %v345_v2 = vpop.permute.xlu0 %344 }
 0x990   :  { %707 = vmatmul.msk.f32.vlgmr.msra.gmra.mxu2 %vm34_vm0, %v345_v2 }
 0xa13   :  { %v365_v5 = vpop.f32.mrf.mxu2 }
 0xa14   :  { %v368_v6 = vadd.f32 %v365_v5, %v958_v4 }
 0xa16   :  { %v708_v7 = vmul.f32 -1.442695, %v368_v6 }
 0xa18   :  { %753 = vpow2.f32 %v708_v7 }
 0xa1e   :  { %v754_v8 = vpop.eup %753 }
 0xa1f   :  { %v372_v9 = vadd.f32 1.0, %v754_v8 }
 0xa21   :  { %755 = vrcp.f32 %v372_v9  ;;  %v384_v15 = vand.u32 2147483648, %v372_v9  ;;  %v382_v17 = vand.u32 2147483647, %v372_v9  ;;  %vm378_vm6 = vweird.f32 %v372_v9 }
 0xa23   :  { %v385_v10 = vor.u32 1.1754944e-38, %v384_v15  ;;  %vm383_vm8 = vcmp.eq.f32.partialorder %v382_v17, 8.507059e+37 }
 0xa27   :  { %v756_v11 = vpop.eup %755 }
 0xa28   :  { %v374_v12 = vmul.f32 %v756_v11, %v372_v9  ;;  %vm379_vm5 = vweird.f32 %v756_v11 }
 0xa29   :  { %vm380_vm7 = vmor %vm378_vm6, %vm379_vm5 }
 0xa2a   :  { %v375_v14 = vsub.f32 1.0, %v374_v12 }
 0xa2c   :  { %v376_v16 = vmul.f32 %v756_v11, %v375_v14 }
 0xa2e   :  { %v377_v18 = vadd.f32 %v756_v11, %v376_v16 }
 0xa30   :  { %v381_v19 = vsel %vm380_vm7, %v756_v11, %v377_v18 }
 0xa31   :  { %v386_v20 = vsel %vm383_vm8, %v385_v10, %v381_v19 }
 0xa32   :  { %v388_v21 = vmul.f32 2.0, %v386_v20  ;;  %v393_v26 = vmul.f32 %v391_v25, %v386_v20 }
 0xa34   :  { %v709_v22 = vadd.f32 -1.0, %v388_v21 }
 0xa36   :  { %395 = vrot.lane.b32.xlu1 %v709_v22, %s804_s3 }
 0xaa8   :  { %v396_v23 = vpop.permute.xlu1 %395 }
 0xaa9   :  { %v398_v24 = vmul.f32 %v396_v23, %v386_v20 }
 0xaab   :  { %400 = vrot.lane.b32.xlu2 %v398_v24, %s805_s15 }
 0xb05   :  { %v401_v27 = vpop.permute.xlu2 %400 }
 0xb06   :  { %v403_v28 = vadd.f32 %v401_v27, %v393_v26 }
 0xb08   :  { %757 = vtanh.f32 %v403_v28  ;;  %v461_v13 = vrot.slane %v403_v28, 6 }
 0xb0e   :  { %v758_v29 = vpop.eup %757 }
 0xb0f   :  { %406 = vrot.lane.b32.xlu0 %v758_v29, %s804_s3 }
 0xb81   :  { %v407_v30 = vpop.permute.xlu0 %406 }
 0xb82   :  { %v964_v31 = vmul.f32 %v407_v30, %v386_v20 }
 0xb84   :  { %411 = vrot.lane.b32.xlu1 %v964_v31, %s805_s15 }
 0xbf6   :  { %v412_v32 = vpop.permute.xlu1 %411 }
 0xbf7   :  { %710 = vmatmul.msk.f32.vlgmr.msra.gmra.mxu3 %vm34_vm0, %v412_v32 }
 0xc7a   :  { %v432_v33 = vpop.f32.mrf.mxu3 }
 0xc7b   :  { %v436_v34 = vrot.slane %v432_v33, 6 }
 0xc7d   :  { %v438_v35 = vadd.f32 %v436_v34, %v958_v4 }
 0xc7f   :  { %v711_v36 = vmul.f32 -1.442695, %v438_v35 }
 0xc81   :  { %759 = vpow2.f32 %v711_v36 }
 0xc87   :  { %v760_v38 = vpop.eup %759 }
 0xc88   :  { %v442_v39 = vadd.f32 1.0, %v760_v38 }
 0xc8a   :  { %761 = vrcp.f32 %v442_v39  ;;  %v454_v43 = vand.u32 2147483648, %v442_v39  ;;  %v452_v45 = vand.u32 2147483647, %v442_v39  ;;  %vm448_vm10 = vweird.f32 %v442_v39 }
 0xc8c   :  { %v455_v46 = vor.u32 1.1754944e-38, %v454_v43  ;;  %vm453_vm12 = vcmp.eq.f32.partialorder %v452_v45, 8.507059e+37 }
 0xc90   :  { %v762_v40 = vpop.eup %761 }
 0xc91   :  { %v444_v41 = vmul.f32 %v762_v40, %v442_v39  ;;  %vm449_vm9 = vweird.f32 %v762_v40 }
 0xc92   :  { %vm450_vm11 = vmor %vm448_vm10, %vm449_vm9 }
 0xc93   :  { %v445_v42 = vsub.f32 1.0, %v444_v41 }
 0xc95   :  { %v446_v44 = vmul.f32 %v762_v40, %v445_v42 }
 0xc97   :  { %v447_v37 = vadd.f32 %v762_v40, %v446_v44 }
 0xc99   :  { %v451_v47 = vsel %vm450_vm11, %v762_v40, %v447_v37 }
 0xc9a   :  { %v456_v48 = vsel %vm453_vm12, %v455_v46, %v451_v47 }
 0xc9b   :  { %v458_v49 = vmul.f32 2.0, %v456_v48  ;;  %v463_v53 = vmul.f32 %v461_v13, %v456_v48 }
 0xc9d   :  { %v712_v50 = vadd.f32 -1.0, %v458_v49  ;;  %v633_v49 = vld [vmem:[%s1018_s4 + $0x10] sm:$0xff] }
 0xc9f   :  { %465 = vrot.lane.b32.xlu2 %v712_v50, %s804_s3  ;;  %v632_v50 = vld [vmem:[%s1018_s4 + $0x8] sm:$0xff] }
 0xcf9   :  { %v466_v51 = vpop.permute.xlu2 %465 }
 0xcfa   :  { %v468_v52 = vmul.f32 %v466_v51, %v456_v48  ;;  %v631_v51 = vld [vmem:[%s1018_s4] sm:$0xff] }
 0xcfc   :  { %470 = vrot.lane.b32.xlu0 %v468_v52, %s805_s15 }
 0xd6e   :  { %v471_v54 = vpop.permute.xlu0 %470 }
 0xd6f   :  { %v473_v55 = vadd.f32 %v471_v54, %v463_v53 }
 0xd71   :  { %763 = vtanh.f32 %v473_v55  ;;  %v532_v20 = vrot.slane %v473_v55, 6 }
 0xd77   :  { %v764_v56 = vpop.eup %763 }
 0xd78   :  { %476 = vrot.lane.b32.xlu1 %v764_v56, %s804_s3 }
 0xdea   :  { %v477_v57 = vpop.permute.xlu1 %476 }
 0xdeb   :  { %v479_v58 = vmul.f32 %v477_v57, %v456_v48  ;;  %v634_v48 = vld [vmem:[%s1018_s4 + $0x18] sm:$0xff]  ;;  %s806_s4 = smov [#allocation2]  }
 0xdec   :  { %661 = vmatpush.msrb.mxu2 %v634_v48  ;;  %s680_s27 = sshll.u32 %s806_s4, 4  ;;  %s681_s27 = int_to_ptr.vmem [resolvable:$true] %s680_s27 }
 0xded   :  { %v481_v59 = vrot.slane %v479_v58, 2  ;;  %v628_v27 = vsel %vm622_vm13, %v964_v31, %v479_v58  ;;  %v728_v58 = vld [vmem:[%s1019_s5] ss:$0 sm:$0xff]  ;;  %s682_s5 = sshll.u32 %s1020_s6, 4  ;;  %s683_s5 = int_to_ptr.hbm [resolvable:$true] %s682_s5 }
 0xdee   :  { %662 = vmatpush.msrb.mxu2 %v633_v49 }
 0xdef   :  { %482 = vrot.lane.b32.xlu2 %v481_v59, %s805_s15 }
 0xdf0   :  { %663 = vmatpush.msrb.mxu2 %v632_v50 }
 0xdf2   :  { %664 = vmatpush.msrb.mxu2 %v631_v51 }
 0xe49   :  { %v483_v60 = vpop.permute.xlu2 %482 }
 0xe4a   :  { %713 = vmatmul.msk.f32.vlgmr.msrb.gmra.mxu0 %vm34_vm0, %v483_v60 }
 0xec7   :  { %v503_v61 = vpop.f32.mrf.mxu0 }
 0xec8   :  { %v507_v62 = vrot.slane %v503_v61, 4 }
 0xeca   :  { %v509_v63 = vadd.f32 %v507_v62, %v958_v4 }
 0xecc   :  { %v714_v1 = vmul.f32 -1.442695, %v509_v63 }
 0xece   :  { %765 = vpow2.f32 %v714_v1 }
 0xed4   :  { %v766_v2 = vpop.eup %765 }
 0xed5   :  { %v513_v3 = vadd.f32 1.0, %v766_v2 }
 0xed7   :  { %767 = vrcp.f32 %v513_v3  ;;  %v525_v8 = vand.u32 2147483648, %v513_v3  ;;  %v523_v11 = vand.u32 2147483647, %v513_v3  ;;  %vm519_vm1 = vweird.f32 %v513_v3 }
 0xed9   :  { %v526_v14 = vor.u32 1.1754944e-38, %v525_v8  ;;  %vm524_vm3 = vcmp.eq.f32.partialorder %v523_v11, 8.507059e+37 }
 0xedd   :  { %v768_v5 = vpop.eup %767 }
 0xede   :  { %v515_v6 = vmul.f32 %v768_v5, %v513_v3  ;;  %vm520_vm15 = vweird.f32 %v768_v5 }
 0xedf   :  { %vm521_vm2 = vmor %vm519_vm1, %vm520_vm15 }
 0xee0   :  { %v516_v7 = vsub.f32 1.0, %v515_v6 }
 0xee2   :  { %v517_v9 = vmul.f32 %v768_v5, %v516_v7 }
 0xee4   :  { %v518_v12 = vadd.f32 %v768_v5, %v517_v9 }
 0xee6   :  { %v522_v15 = vsel %vm521_vm2, %v768_v5, %v518_v12 }
 0xee7   :  { %v527_v16 = vsel %vm524_vm3, %v526_v14, %v522_v15 }
 0xee8   :  { %v529_v17 = vmul.f32 2.0, %v527_v16  ;;  %v534_v21 = vmul.f32 %v532_v20, %v527_v16 }
 0xeea   :  { %v715_v18 = vadd.f32 -1.0, %v529_v17 }
 0xeec   :  { %536 = vrot.lane.b32.xlu0 %v715_v18, %s804_s3 }
 0xf5e   :  { %v537_v10 = vpop.permute.xlu0 %536 }
 0xf5f   :  { %v539_v19 = vmul.f32 %v537_v10, %v527_v16 }
 0xf61   :  { %541 = vrot.lane.b32.xlu1 %v539_v19, %s805_s15 }
 0xfd3   :  { %v542_v22 = vpop.permute.xlu1 %541 }
 0xfd4   :  { %v544_v23 = vadd.f32 %v542_v22, %v534_v21 }
 0xfd6   :  { %769 = vtanh.f32 %v544_v23  ;;  %v603_v53 = vrot.slane %v544_v23, 6 }
 0xfdc   :  { %v770_v24 = vpop.eup %769 }
 0xfdd   :  { %547 = vrot.lane.b32.xlu2 %v770_v24, %s804_s3 }
0x1037   :  { %v548_v25 = vpop.permute.xlu2 %547 }
0x1038   :  { %v550_v26 = vmul.f32 %v548_v25, %v527_v16 }
0x103a   :  { %v552_v28 = vrot.slane %v550_v26, 4  ;;  %v629_v29 = vsel %vm624_vm14, %v628_v27, %v550_v26 }
0x103c   :  { %553 = vrot.lane.b32.xlu0 %v552_v28, %s805_s15 }
0x10ae   :  { %v554_v30 = vpop.permute.xlu0 %553 }
0x10af   :  { %716 = vmatmul.msk.f32.vlgmr.msra.gmra.mxu1 %vm34_vm0, %v554_v30 }
0x112c   :  { %v574_v32 = vpop.f32.mrf.mxu1 }
0x112d   :  { %v578_v33 = vrot.slane %v574_v32, 2 }
0x112f   :  { %v580_v34 = vadd.f32 %v578_v33, %v958_v4 }
0x1131   :  { %v717_v35 = vmul.f32 -1.442695, %v580_v34 }
0x1133   :  { %771 = vpow2.f32 %v717_v35 }
0x1139   :  { %v772_v36 = vpop.eup %771 }
0x113a   :  { %v584_v38 = vadd.f32 1.0, %v772_v36 }
0x113c   :  { %773 = vrcp.f32 %v584_v38  ;;  %v596_v41 = vand.u32 2147483648, %v584_v38  ;;  %v594_v43 = vand.u32 2147483647, %v584_v38  ;;  %vm590_vm14 = vweird.f32 %v584_v38 }
0x113e   :  { %v597_v45 = vor.u32 1.1754944e-38, %v596_v41  ;;  %vm595_vm6 = vcmp.eq.f32.partialorder %v594_v43, 8.507059e+37 }
0x1142   :  { %v774_v39 = vpop.eup %773 }
0x1143   :  { %v586_v40 = vmul.f32 %v774_v39, %v584_v38  ;;  %vm591_vm13 = vweird.f32 %v774_v39 }
0x1144   :  { %vm592_vm5 = vmor %vm590_vm14, %vm591_vm13 }
0x1145   :  { %v587_v31 = vsub.f32 1.0, %v586_v40 }
0x1147   :  { %v588_v42 = vmul.f32 %v774_v39, %v587_v31 }
0x1149   :  { %v589_v44 = vadd.f32 %v774_v39, %v588_v42 }
0x114b   :  { %v593_v37 = vsel %vm592_vm5, %v774_v39, %v589_v44 }
0x114c   :  { %v598_v46 = vsel %vm595_vm6, %v597_v45, %v593_v37 }
0x114d   :  { %v600_v4 = vmul.f32 2.0, %v598_v46  ;;  %v605_v54 = vmul.f32 %v603_v53, %v598_v46 }
0x114f   :  { %v718_v47 = vadd.f32 -1.0, %v600_v4 }
0x1151   :  { %607 = vrot.lane.b32.xlu1 %v718_v47, %s804_s3 }
0x1159   :  { %641 = vrot.lane.b32.xlu1 %v949_v0, %s805_s15 }
0x11c3   :  { %v608_v0 = vpop.permute.xlu1 %607 }
0x11c4   :  { %v610_v52 = vmul.f32 %v608_v0, %v598_v46 }
0x11c6   :  { %612 = vrot.lane.b32.xlu2 %v610_v52, %s805_s15 }
0x11cb   :  { %v642_v13 = vpop.permute.xlu1 %641 }
0x11cc   :  { %719 = vmatmul.msk.f32.vlgmr.msrb.gmra.mxu2 %vm34_vm0, %v642_v13 }
0x1220   :  { %v613_v55 = vpop.permute.xlu2 %612 }
0x1221   :  { %v615_v56 = vadd.f32 %v613_v55, %v605_v54 }
0x1223   :  { %775 = vtanh.f32 %v615_v56 }
0x1229   :  { %v776_v57 = vpop.eup %775 }
0x122a   :  { %618 = vrot.lane.b32.xlu0 %v776_v57, %s804_s3 }
0x124f   :  { %v666_v59 = vpop.f32.mrf.mxu2 }
0x1250   :  { %v667_v60 = vadd.f32 %v728_v58, %v666_v59 }
0x1252   :  { %v672_v61 = vmax.f32 %v667_v60, 0.0 }
0x1254   :  { %674 = vst.msk [vmem:[#allocation2] sm:$0xff] %vm34_vm0, %v672_v61 }
0x129c   :  { %v619_v62 = vpop.permute.xlu0 %618 }
0x129d   :  { %v621_v63 = vmul.f32 %v619_v62, %v598_v46 }
0x129f   :  { %v630_v1 = vsel %vm626_vm4, %v629_v29, %v621_v63 }
0x12a0   :  { %643 = vrot.lane.b32.xlu2 %v630_v1, %s805_s15 }
0x12fa   :  { %v644_v2 = vpop.permute.xlu2 %643 }
0x12fb   :  { %720 = vmatmul.msk.f32.gmra.mxu2 %vm34_vm0, %v644_v2 }
0x137e   :  { %v669_v3 = vpop.f32.mrf.mxu2 }
0x137f   :  { %v670_v5 = vadd.f32 %v728_v58, %v669_v3 }
0x1381   :  { %v673_v6 = vmax.f32 %v670_v5, 0.0 }
0x1383   :  { %675 = vst.msk [vmem:[#allocation2 + $0x8] sm:$0xff] %vm34_vm0, %v673_v6 }
0x1384   :  { %688 = dma.vmem_to_hbm [thread:$0]  %s681_s27, 256, %s683_s5, [#allocation3], %s807_s30, %s807_s30, %s808_s7  }
0x1385   :  { %801 = dma.done.wait [#allocation3], 256  }
0x1386   :  { %802 = vsyncadd [#allocation3], 4294967040 }
0x1387   :  { %693 = vsyncpa [#allocation3], 1 }

</bundles_post_ra>
